<compile_context>
chip_gen: v7x
topology: tpu7x:2x2x1
jax: 0.10.0
libtpu: 0.0.40
codegen_flags: <defaults>
</compile_context>

<pallas_src>
import functools

import numpy as np
import jax
import jax.numpy as jnp
from jax import lax
from jax.experimental import pallas as pl
from jax.experimental.pallas import tpu as pltpu


VMEM_LIMIT = 32 * 1024 * 1024  # generous for these tile sizes, safe on v5e/v6e/v7x


# ----------------------------------------------------------------------------
# helpers (glue)
# ----------------------------------------------------------------------------
def _fold_bn(gamma, beta, mean, var, eps=1e-5):
    scale = gamma / jnp.sqrt(var + eps)
    shift = beta - mean * scale
    return scale, shift


def grouped_dense_taps(w, G):
    """PyTorch grouped conv weight (Cout, Cin//G, 3, 3) -> dense per-tap (9, Cin, Cout)."""
    w = np.asarray(w)
    Cout, Cpg, KH, KW = w.shape
    Cin = Cpg * G
    Opg = Cout // G
    dense = np.zeros((KH * KW, Cin, Cout), np.float32)
    for o in range(Cout):
        g = o // Opg
        for cl in range(Cpg):
            ci = g * Cpg + cl
            dense[:, ci, o] = w[o, cl].reshape(-1)      # tap order = ky*3 + kx
    return jnp.asarray(dense)


def build_im2col(x_nhwc, M):
    """Per-branch im2col slabs for a 3x3 conv with dilation m+1 -> (B, M, H*W, 9*C)."""
    B, H, W, C = x_nhwc.shape
    slabs = []
    for m in range(M):
        d = m + 1
        xp = jnp.pad(x_nhwc, ((0, 0), (d, d), (d, d), (0, 0)))
        taps = []
        for ky in range(3):
            for kx in range(3):
                taps.append(lax.slice(xp, (0, ky * d, kx * d, 0),
                                          (B, ky * d + H, kx * d + W, C)))
        slabs.append(jnp.concatenate(taps, axis=-1).reshape(B, H * W, 9 * C))
    return jnp.stack(slabs, axis=1)


# ----------------------------------------------------------------------------
# kernel 1: 1x1 conv (BN scale folded into weight) + bias + ReLU
# ----------------------------------------------------------------------------
def _mm_bias_relu_kernel(x_ref, w_ref, b_ref, o_ref):
    y = jnp.dot(x_ref[...], w_ref[...], preferred_element_type=jnp.float32)
    y = jnp.maximum(y + b_ref[...], 0.0)
    o_ref[...] = y.astype(o_ref.dtype)


def conv1x1_bn_relu(x2d, w_bf16, shift, out_dtype=jnp.bfloat16, tm=1024):
    N, Cin = x2d.shape
    Cout = w_bf16.shape[1]
    tm = min(tm, N)
    grid = (pl.cdiv(N, tm),)
    flops = 2 * N * Cin * Cout
    bytes_accessed = (N * Cin * 2 + Cin * Cout * 2 + Cout * 4
                      + N * Cout * jnp.dtype(out_dtype).itemsize)
    return pl.pallas_call(
        _mm_bias_relu_kernel,
        out_shape=jax.ShapeDtypeStruct((N, Cout), out_dtype),
        grid_spec=pltpu.PrefetchScalarGridSpec(
            num_scalar_prefetch=0,
            grid=grid,
            in_specs=[
                pl.BlockSpec((tm, Cin), lambda i: (i, 0)),
                pl.BlockSpec((Cin, Cout), lambda i: (0, 0)),
                pl.BlockSpec((1, Cout), lambda i: (0, 0)),
            ],
            out_specs=pl.BlockSpec((tm, Cout), lambda i: (i, 0)),
        ),
        compiler_params=pltpu.CompilerParams(
            dimension_semantics=("parallel",),
            vmem_limit_bytes=VMEM_LIMIT),
        cost_estimate=pl.CostEstimate(flops=int(flops), transcendentals=0,
                                      bytes_accessed=int(bytes_accessed)),
    )(x2d, w_bf16, shift.reshape(1, Cout))


# ----------------------------------------------------------------------------
# kernel 2: fused SKConv + residual epilogue (per batch element)
# ----------------------------------------------------------------------------
def _sk_fused_kernel(xcol_ref, wt_ref, bnb_ref, wfc_ref, fcb_ref,
                     wfcs_ref, bfcs_ref, xres_ref, w3_ref, wsc_ref, bres_ref,
                     o_ref, feats_scr, *, M, HW):
    C = wt_ref.shape[2]
    Cout = o_ref.shape[2]

    # M branches: (HW, 9C) @ (9C, C) (BN scale folded) + bias + ReLU;
    # accumulate the branch sum U on the fly.
    U = jnp.zeros((HW, C), jnp.float32)
    for m in range(M):
        f = jnp.dot(xcol_ref[0, m], wt_ref[m], preferred_element_type=jnp.float32)
        f = jnp.maximum(f + bnb_ref[m:m + 1, :], 0.0)
        feats_scr[m] = f
        U = U + f

    # global average pool
    s = jnp.sum(U, axis=0, keepdims=True) * (1.0 / float(HW))            # (1, C)

    # fc: 1x1 conv C->d (BN scale folded) + bias + ReLU
    z = jnp.dot(s, wfc_ref[...], preferred_element_type=jnp.float32)
    z = jnp.maximum(z + fcb_ref[...], 0.0)                               # (1, d)

    # per-branch attention logits (1x1 conv d->C with bias), softmax over M
    logits = jnp.concatenate(
        [jnp.dot(z, wfcs_ref[m], preferred_element_type=jnp.float32)
         + bfcs_ref[m:m + 1, :] for m in range(M)], axis=0)              # (M, C)
    logits = logits - jnp.max(logits, axis=0, keepdims=True)
    e = jnp.exp(logits)
    attn = e * pl.reciprocal(jnp.sum(e, axis=0, keepdims=True), approx=True)

    # weighted recombination -> V  (stays in VMEM, never hits HBM)
    v = feats_scr[0] * attn[0:1, :]
    for m in range(1, M):
        v = v + feats_scr[m] * attn[m:m + 1, :]

    # residual epilogue: conv3*BN + shortcut conv*BN (scales folded) + add + ReLU
    y = jnp.dot(v.astype(w3_ref.dtype), w3_ref[...],
                preferred_element_type=jnp.float32)
    y = y + jnp.dot(xres_ref[0], wsc_ref[...], preferred_element_type=jnp.float32)
    out = jnp.maximum(y + bres_ref[...], 0.0)
    o_ref[...] = out.reshape(1, HW, Cout)


def sk_fused(xcol, w_taps, bn_b, wfc, fc_b, wfcs, bfcs, x_res, w3, wsc, b_res, M):
    B, _, HW, KC = xcol.shape
    C = w_taps.shape[2]
    d = wfc.shape[1]
    Cin = x_res.shape[2]
    Cout = w3.shape[1]
    kern = functools.partial(_sk_fused_kernel, M=M, HW=HW)
    flops = 2 * B * (M * HW * KC * C + C * d + M * d * C
                     + HW * C * Cout + HW * Cin * Cout) + 4 * B * M * HW * C
    bytes_accessed = (xcol.size * 2 + w_taps.size * 2 + x_res.size * 2
                      + (w3.size + wsc.size) * 2
                      + (bn_b.size + bfcs.size + wfcs.size + wfc.size
                         + fc_b.size + b_res.size) * 4
                      + B * HW * Cout * 4)
    return pl.pallas_call(
        kern,
        out_shape=jax.ShapeDtypeStruct((B, HW, Cout), jnp.float32),
        grid_spec=pltpu.PrefetchScalarGridSpec(
            num_scalar_prefetch=0,
            grid=(B,),
            in_specs=[
                pl.BlockSpec((1, M, HW, KC), lambda b: (b, 0, 0, 0)),
                pl.BlockSpec((M, KC, C), lambda b: (0, 0, 0)),
                pl.BlockSpec((M, C), lambda b: (0, 0)),
                pl.BlockSpec((C, d), lambda b: (0, 0)),
                pl.BlockSpec((1, d), lambda b: (0, 0)),
                pl.BlockSpec((M, d, C), lambda b: (0, 0, 0)),
                pl.BlockSpec((M, C), lambda b: (0, 0)),
                pl.BlockSpec((1, HW, Cin), lambda b: (b, 0, 0)),
                pl.BlockSpec((C, Cout), lambda b: (0, 0)),
                pl.BlockSpec((Cin, Cout), lambda b: (0, 0)),
                pl.BlockSpec((1, Cout), lambda b: (0, 0)),
            ],
            out_specs=pl.BlockSpec((1, HW, Cout), lambda b: (b, 0, 0)),
            scratch_shapes=[pltpu.VMEM((M, HW, C), jnp.float32)],
        ),
        compiler_params=pltpu.CompilerParams(
            dimension_semantics=("parallel",),
            vmem_limit_bytes=VMEM_LIMIT),
        cost_estimate=pl.CostEstimate(flops=int(flops),
                                      transcendentals=int(B * (M * C + C)),
                                      bytes_accessed=int(bytes_accessed)),
    )(xcol, w_taps, bn_b, wfc, fc_b.reshape(1, d), wfcs, bfcs,
      x_res, w3, wsc, b_res.reshape(1, Cout))


# ----------------------------------------------------------------------------
# parameter init (deterministic, synthetic)
# ----------------------------------------------------------------------------
def init_params(key, Cin, Cmid, Cout, M, G, r, L):
    d = max(int(Cmid / r), L)
    keys = iter(jax.random.split(key, 64))

    def nrm(shape, s=0.1):
        return s * jax.random.normal(next(keys), shape, jnp.float32)

    def bn(C):
        gamma = 1.0 + nrm((C,))
        beta = nrm((C,))
        mean = nrm((C,))
        var = jax.random.uniform(next(keys), (C,), jnp.float32, 0.5, 1.5)
        return _fold_bn(gamma, beta, mean, var)

    P = {}
    P['w1'], P['bn1'] = nrm((Cin, Cmid)), bn(Cmid)                     # conv1
    P['wb'] = [nrm((Cmid, Cmid // G, 3, 3)) for _ in range(M)]         # SK branch convs (torch layout)
    P['bnb'] = [bn(Cmid) for _ in range(M)]
    P['wfc'], P['bnfc'] = nrm((Cmid, d)), bn(d)                        # SK fc
    P['wfcs'], P['bfcs'] = nrm((M, d, Cmid)), nrm((M, Cmid))           # SK attention fcs (with bias)
    P['w3'], P['bn3'] = nrm((Cmid, Cout)), bn(Cout)                    # conv3
    P['wsc'], P['bnsc'] = nrm((Cin, Cout)), bn(Cout)                   # shortcut (in != out)
    P['d'] = d
    return P


# ----------------------------------------------------------------------------
# forward passes
# ----------------------------------------------------------------------------
def sk_unit_forward(x_nchw, P, M, G):
    x = jnp.transpose(x_nchw, (0, 2, 3, 1)).astype(jnp.float32)        # NCHW -> NHWC
    B, H, W, Cin = x.shape
    Cmid = P['w1'].shape[1]
    Cout = P['w3'].shape[1]
    N = B * H * W
    HW = H * W
    x2_bf = x.reshape(N, Cin).astype(jnp.bfloat16)

    # conv1 + BN + ReLU  (BN scale folded into the bf16 weight, bf16 output)
    s1, b1 = P['bn1']
    w1f = (P['w1'] * s1[None, :]).astype(jnp.bfloat16)
    o1 = conv1x1_bn_relu(x2_bf, w1f, b1)                               # (N, Cmid) bf16
    o1_nhwc = o1.reshape(B, H, W, Cmid)

    # SKConv: per-branch im2col slabs + block-diagonal per-branch weights (BN folded)
    xcol = build_im2col(o1_nhwc, M)                                    # (B, M, HW, 9*Cmid) bf16
    w_taps, bn_b = [], []
    for m in range(M):
        dense = grouped_dense_taps(P['wb'][m], G).reshape(9 * Cmid, Cmid)
        s, b = P['bnb'][m]
        w_taps.append((dense * s[None, :]).astype(jnp.bfloat16))
        bn_b.append(b)
    w_taps = jnp.stack(w_taps, axis=0)                                 # (M, 9*Cmid, Cmid) bf16
    bn_b = jnp.stack(bn_b, axis=0)                                     # (M, Cmid) f32

    sfc, bfc = P['bnfc']
    wfc_f = P['wfc'] * sfc[None, :]                                    # f32, BN folded

    # residual epilogue weights (BN scales folded, biases merged)
    s3, b3 = P['bn3']
    ss, bs = P['bnsc']
    w3f = (P['w3'] * s3[None, :]).astype(jnp.bfloat16)
    wscf = (P['wsc'] * ss[None, :]).astype(jnp.bfloat16)
    b_res = b3 + bs

    out = sk_fused(xcol, w_taps, bn_b, wfc_f, bfc, P['wfcs'], P['bfcs'],
                   x2_bf.reshape(B, HW, Cin), w3f, wscf, b_res, M)     # (B, HW, Cout) f32
    return jnp.transpose(out.reshape(B, H, W, Cout), (0, 3, 1, 2))     # back to NCHW


def sk_unit_reference(x_nchw, P, M, G):
    """Pure-JAX reference (same inference-mode BN folding / bf16 matmul operands)."""
    bf = lambda a: a.astype(jnp.bfloat16)
    x = jnp.transpose(x_nchw, (0, 2, 3, 1)).astype(jnp.float32)
    s1, b1 = P['bn1']
    o1 = jnp.maximum(
        jnp.einsum('bhwc,cd->bhwd', bf(x), bf(P['w1'] * s1[None, :]),
                   preferred_element_type=jnp.float32) + b1, 0.0).astype(jnp.bfloat16)
    feats = []
    for m in range(M):
        dil = m + 1
        s, b = P['bnb'][m]
        w_hwio = jnp.transpose(P['wb'][m], (2, 3, 1, 0)) * s[None, None, None, :]
        y = lax.conv_general_dilated(
            o1, bf(w_hwio), window_strides=(1, 1),
            padding=[(dil, dil), (dil, dil)], rhs_dilation=(dil, dil),
            dimension_numbers=('NHWC', 'HWIO', 'NHWC'), feature_group_count=G,
            preferred_element_type=jnp.float32)
        feats.append(jnp.maximum(y + b, 0.0))
    feats = jnp.stack(feats, axis=1)                                   # (B, M, H, W, C)
    U = jnp.sum(feats, axis=1)
    S = jnp.mean(U, axis=(1, 2))
    sfc, bfc = P['bnfc']
    Z = jnp.maximum(S @ (P['wfc'] * sfc[None, :]) + bfc, 0.0)
    logits = jnp.stack([Z @ P['wfcs'][m] + P['bfcs'][m] for m in range(M)], axis=1)
    attn = jax.nn.softmax(logits, axis=1)
    V = jnp.sum(feats * attn[:, :, None, None, :], axis=1)
    s3, b3 = P['bn3']
    ss, bs = P['bnsc']
    o3 = jnp.einsum('bhwc,cd->bhwd', bf(V), bf(P['w3'] * s3[None, :]),
                    preferred_element_type=jnp.float32)
    sc = jnp.einsum('bhwc,cd->bhwd', bf(x), bf(P['wsc'] * ss[None, :]),
                    preferred_element_type=jnp.float32)
    out = jnp.maximum(o3 + sc + (b3 + bs), 0.0)
    return jnp.transpose(out, (0, 3, 1, 2))


if __name__ == "__main__":
    key = jax.random.PRNGKey(0)
    kx, kp = jax.random.split(key)

    # SKUnit(in_features=32, mid_features=32, out_features=64, M=2, G=4, r=4, stride=1, L=8)
    B, Cin, Cmid, Cout, H, W = 2, 32, 32, 64, 8, 8
    M, G, r, L = 2, 4, 4, 8

    x = jax.random.normal(kx, (B, Cin, H, W), jnp.float32)   # NCHW like PyTorch
    P = init_params(kp, Cin, Cmid, Cout, M, G, r, L)

    out = sk_unit_forward(x, P, M, G)
    out = jax.block_until_ready(out)

    ref = sk_unit_reference(x, P, M, G)
    np.testing.assert_allclose(np.asarray(out), np.asarray(ref), rtol=2e-2, atol=2e-2)
    print("KERNEL_OK")
</pallas_src>

<mosaic_0001>
module attributes {stable_mosaic.version = 11 : i64} {
  func.func @_mm_bias_relu_kernel(%arg0: i32, %arg1: memref<128x32xbf16, #tpu.memory_space<vmem>>, %arg2: memref<32x32xbf16, #tpu.memory_space<vmem>>, %arg3: memref<1x32xf32, #tpu.memory_space<vmem>>, %arg4: memref<128x32xbf16, #tpu.memory_space<vmem>>) attributes {dimension_semantics = [#tpu.dimension_semantics<parallel>], iteration_bounds = array<i64: 1>, scalar_prefetch = 0 : i64, scratch_operands = 0 : i64, tpu.core_type = #tpu.core_type<tc>, window_params = [{transform_indices = @transform_0, window_bounds = array<i64: 128, 32>}, {pipeline_mode = #tpu.pipeline_mode<synchronous>, transform_indices = @transform_1, window_bounds = array<i64: 32, 32>}, {pipeline_mode = #tpu.pipeline_mode<synchronous>, transform_indices = @transform_2, window_bounds = array<i64: 1, 32>}, {transform_indices = @transform_3, window_bounds = array<i64: 128, 32>}]} {
    %c0 = arith.constant 0 : index
    %c0_0 = arith.constant 0 : index
    %0 = vector.load %arg1[%c0, %c0_0] : memref<128x32xbf16, #tpu.memory_space<vmem>>, vector<128x32xbf16>
    %c0_1 = arith.constant 0 : index
    %c0_2 = arith.constant 0 : index
    %1 = vector.load %arg2[%c0_1, %c0_2] : memref<32x32xbf16, #tpu.memory_space<vmem>>, vector<32x32xbf16>
    %cst = arith.constant dense<0.000000e+00> : vector<128x32xf32>
    %2 = tpu.matmul %0, %1, %cst {dimension_numbers = #tpu.dot_dimension_numbers<[1], [0], [0], [1], [0, 0, 1, 1], [], []>} : vector<128x32xbf16>, vector<32x32xbf16>, vector<128x32xf32> -> vector<128x32xf32>
    %c0_3 = arith.constant 0 : index
    %c0_4 = arith.constant 0 : index
    %3 = vector.load %arg3[%c0_3, %c0_4] : memref<1x32xf32, #tpu.memory_space<vmem>>, vector<1x32xf32>
    %4 = vector.broadcast %3 : vector<1x32xf32> to vector<128x32xf32>
    %5 = arith.addf %2, %4 : vector<128x32xf32>
    %cst_5 = arith.constant 0.000000e+00 : f32
    %6 = vector.broadcast %cst_5 : f32 to vector<128x32xf32>
    %7 = arith.maximumf %5, %6 : vector<128x32xf32>
    %8 = arith.truncf %7 : vector<128x32xf32> to vector<128x32xbf16>
    %c0_6 = arith.constant 0 : index
    %c0_7 = arith.constant 0 : index
    %9 = vector.load %arg4[%c0_6, %c0_7] : memref<128x32xbf16, #tpu.memory_space<vmem>>, vector<128x32xbf16>
    tpu.vector_store %arg4[%c0_6, %c0_7], %8 {strides = array<i32>} : memref<128x32xbf16, #tpu.memory_space<vmem>>, vector<128x32xbf16>,
    return
  }
  func.func @transform_0(%arg0: i32) -> (i32, i32) {
    %c0_i32 = arith.constant 0 : i32
    %c0_i32_0 = arith.constant 0 : i32
    return %arg0, %c0_i32 : i32, i32
  }
  func.func @transform_1(%arg0: i32) -> (i32, i32) {
    %c0_i32 = arith.constant 0 : i32
    %c0_i32_0 = arith.constant 0 : i32
    %c0_i32_1 = arith.constant 0 : i32
    return %c0_i32, %c0_i32_0 : i32, i32
  }
  func.func @transform_2(%arg0: i32) -> (i32, i32) {
    %c0_i32 = arith.constant 0 : i32
    %c0_i32_0 = arith.constant 0 : i32
    %c0_i32_1 = arith.constant 0 : i32
    return %c0_i32, %c0_i32_0 : i32, i32
  }
  func.func @transform_3(%arg0: i32) -> (i32, i32) {
    %c0_i32 = arith.constant 0 : i32
    %c0_i32_0 = arith.constant 0 : i32
    return %arg0, %c0_i32 : i32, i32
  }
}

</mosaic_0001>

<bundles_post_ra>
// kernel: tpu_custom_call.1
= control target key start
LH: loop header
LB: loop body
LE: loop exit
PB: predicated region body
PF: predicated region fallthrough
CT: control target
= control target key end

     0   :  { %vm94_vm0 = vcmask 261120   ;;  %vm296_vm1 = vcmask 257024   ;;  %s537_s1 = inlined_call_operand.vmem [shape: bf16[32,32], index: 1, kind: input, shape index: {}]   ;;  %s538_s0 = inlined_call_operand.vmem [shape: bf16[128,32], index: 0, kind: input, shape index: {}]   ;;  %s539_s2 = inlined_call_operand.vmem [shape: f32[1,32], index: 2, kind: input, shape index: {}]   ;;  %s540_s3 = inlined_call_operand.vmem [shape: bf16[128,32], index: 3, kind: output, shape index: {}]  }
   0x1   :  { %v402_v0 = vld [vmem:[%s537_s1] sm:$0xff]   ;;  %v403_v1 = vld [vmem:[%s537_s1 + $0x8] sm:$0xff]   ;;  %v408_v6 = vld [vmem:[%s538_s0 + $0x10] sm:$0xff]  }
   0x2   :  { %378 = vmatprep.subr.bf16.mxu0 %v402_v0  ;;  %398 = vmatprep.subr.bf16.mxu1 %v402_v0  ;;  %v404_v2 = vld [vmem:[%s538_s0] sm:$0xff]   ;;  %v406_v4 = vld [vmem:[%s538_s0 + $0x8] sm:$0xff]   ;;  %v409_v7 = vld [vmem:[%s538_s0 + $0x30] sm:$0xff]  }
   0x3   :  { %379 = vmatpush3.bf16.msra.mxu0 %v402_v0  ;;  %400 = vmatpush3.bf16.msra.mxu1 %v402_v0  ;;  %v405_v3 = vld [vmem:[%s538_s0 + $0x20] sm:$0xff]   ;;  %v407_v5 = vld [vmem:[%s538_s0 + $0x28] sm:$0xff]   ;;  %v410_v8 = vld [vmem:[%s538_s0 + $0x18] sm:$0xff]  }
   0x4   :  { %380 = vmatprep.subr.bf16.mxu0 %v403_v1  ;;  %399 = vmatprep.subr.bf16.mxu1 %v403_v1  ;;  %v411_v9 = vld [vmem:[%s538_s0 + $0x38] sm:$0xff]   ;;  %v317_v10 = vld [vmem:[%s539_s2] ss:$0 sm:$0xff] }
   0x5   :  { %382 = vmatprep.mubr.msk.bf16.mxu0 %vm94_vm0, %v404_v2  ;;  %390 = vmatprep.mubr.msk.bf16.mxu1 %vm94_vm0, %v405_v3 }
   0x7   :  { %381 = vmatpush3.bf16.msra.mxu0 %v403_v1  ;;  %401 = vmatpush3.bf16.msra.mxu1 %v403_v1 }
   0xa   :  { %383 = vmatmul.mubr.msk.bf16.vlgmr.msra.gmra.mrb[0].mxu0 %vm94_vm0, %v406_v4  ;;  %391 = vmatmul.mubr.msk.bf16.vlgmr.msra.gmra.mrb[0].mxu1 %vm94_vm0, %v407_v5 }
   0xb   :  { %386 = vmatprep.mubr.msk.bf16.mxu0 %vm94_vm0, %v408_v6  ;;  %394 = vmatprep.mubr.msk.bf16.mxu1 %vm94_vm0, %v409_v7 }
  0x12   :  { %387 = vmatmul.mubr.msk.bf16.gmra.mrb[4].mxu0 %vm94_vm0, %v410_v8  ;;  %395 = vmatmul.mubr.msk.bf16.gmra.mrb[4].mxu1 %vm94_vm0, %v411_v9 }
  0xdd   :  { %v384_v11 = vpop.f32.mrb[0].mxu0  ;;  %v392_v12 = vpop.f32.mrb[0].mxu1 }
  0xde   :  { %v162_v13 = vadd.f32 %v384_v11, %v317_v10  ;;  %v194_v14 = vadd.f32 %v392_v12, %v317_v10  ;;  %v153_v15 = vpop.f32.mrb[1].mxu0  ;;  %v185_v16 = vpop.f32.mrb[1].mxu1 }
  0xdf   :  { %v154_v17 = vadd.f32 %v317_v10, %v153_v15  ;;  %v186_v18 = vadd.f32 %v317_v10, %v185_v16  ;;  %v385_v19 = vpop.f32.mrb[2].mxu0  ;;  %v393_v20 = vpop.f32.mrb[2].mxu1 }
  0xe0   :  { %v218_v21 = vmax.f32 %v162_v13, 0.0  ;;  %v226_v22 = vmax.f32 %v194_v14, 0.0  ;;  %v165_v23 = vadd.f32 %v385_v19, %v317_v10  ;;  %v197_v24 = vadd.f32 %v393_v20, %v317_v10  ;;  %v156_v25 = vpop.f32.mrb[3].mxu0  ;;  %v188_v26 = vpop.f32.mrb[3].mxu1 }
  0xe1   :  { %v216_v27 = vmax.f32 %v154_v17, 0.0  ;;  %v224_v28 = vmax.f32 %v186_v18, 0.0  ;;  %v157_v29 = vadd.f32 %v317_v10, %v156_v25  ;;  %v189_v30 = vadd.f32 %v317_v10, %v188_v26 }
  0xe2   :  { %v354_v31 = vpack.c.bf16 %v218_v21, %v218_v21  ;;  %v362_v32 = vpack.c.bf16 %v226_v22, %v226_v22  ;;  %v219_v33 = vmax.f32 %v165_v23, 0.0  ;;  %v227_v34 = vmax.f32 %v197_v24, 0.0 }
  0xe3   :  { %v352_v35 = vpack.c.bf16 %v216_v27, %v216_v27  ;;  %v360_v36 = vpack.c.bf16 %v224_v28, %v224_v28  ;;  %v217_v37 = vmax.f32 %v157_v29, 0.0  ;;  %v225_v38 = vmax.f32 %v189_v30, 0.0 }
  0xe4   :  { %299 = vst.msk [vmem:[%s540_s3 + $0x8] sm:$0xf] %vm296_vm1, %v354_v31  ;;  %307 = vst.msk [vmem:[%s540_s3 + $0x28] sm:$0xf] %vm296_vm1, %v362_v32  ;;  %v355_v39 = vpack.c.bf16 %v219_v33, %v219_v33  ;;  %v363_v40 = vpack.c.bf16 %v227_v34, %v227_v34 }
  0xe5   :  { %297 = vst.msk [vmem:[%s540_s3] sm:$0xf] %vm296_vm1, %v352_v35  ;;  %305 = vst.msk [vmem:[%s540_s3 + $0x20] sm:$0xf] %vm296_vm1, %v360_v36  ;;  %v353_v41 = vpack.c.bf16 %v217_v37, %v217_v37  ;;  %v361_v42 = vpack.c.bf16 %v225_v38, %v225_v38  ;;  %v388_v43 = vpop.f32.mrb[4].mxu0  ;;  %v396_v44 = vpop.f32.mrb[4].mxu1 }
  0xe6   :  { %300 = vst.msk [vmem:[%s540_s3 + $0xc] sm:$0xf] %vm296_vm1, %v355_v39  ;;  %308 = vst.msk [vmem:[%s540_s3 + $0x2c] sm:$0xf] %vm296_vm1, %v363_v40  ;;  %v178_v45 = vadd.f32 %v388_v43, %v317_v10  ;;  %v210_v46 = vadd.f32 %v396_v44, %v317_v10  ;;  %v169_v47 = vpop.f32.mrb[5].mxu0  ;;  %v201_v48 = vpop.f32.mrb[5].mxu1 }
  0xe7   :  { %298 = vst.msk [vmem:[%s540_s3 + $0x4] sm:$0xf] %vm296_vm1, %v353_v41  ;;  %306 = vst.msk [vmem:[%s540_s3 + $0x24] sm:$0xf] %vm296_vm1, %v361_v42  ;;  %v170_v49 = vadd.f32 %v317_v10, %v169_v47  ;;  %v202_v50 = vadd.f32 %v317_v10, %v201_v48  ;;  %v389_v51 = vpop.f32.mrb[6].mxu0  ;;  %v397_v52 = vpop.f32.mrb[6].mxu1 }
  0xe8   :  { %v222_v53 = vmax.f32 %v178_v45, 0.0  ;;  %v230_v54 = vmax.f32 %v210_v46, 0.0  ;;  %v181_v55 = vadd.f32 %v389_v51, %v317_v10  ;;  %v213_v56 = vadd.f32 %v397_v52, %v317_v10  ;;  %v172_v57 = vpop.f32.mrb[7].mxu0  ;;  %v204_v58 = vpop.f32.mrb[7].mxu1 }
  0xe9   :  { %v220_v59 = vmax.f32 %v170_v49, 0.0  ;;  %v228_v60 = vmax.f32 %v202_v50, 0.0  ;;  %v173_v61 = vadd.f32 %v317_v10, %v172_v57  ;;  %v205_v62 = vadd.f32 %v317_v10, %v204_v58 }
  0xea   :  { %v358_v63 = vpack.c.bf16 %v222_v53, %v222_v53  ;;  %v366_v0 = vpack.c.bf16 %v230_v54, %v230_v54  ;;  %v223_v1 = vmax.f32 %v181_v55, 0.0  ;;  %v231_v2 = vmax.f32 %v213_v56, 0.0 }
  0xeb   :  { %v356_v3 = vpack.c.bf16 %v220_v59, %v220_v59  ;;  %v364_v4 = vpack.c.bf16 %v228_v60, %v228_v60  ;;  %v221_v5 = vmax.f32 %v173_v61, 0.0  ;;  %v229_v6 = vmax.f32 %v205_v62, 0.0 }
  0xec   :  { %303 = vst.msk [vmem:[%s540_s3 + $0x18] sm:$0xf] %vm296_vm1, %v358_v63  ;;  %311 = vst.msk [vmem:[%s540_s3 + $0x38] sm:$0xf] %vm296_vm1, %v366_v0  ;;  %v359_v7 = vpack.c.bf16 %v223_v1, %v223_v1  ;;  %v367_v8 = vpack.c.bf16 %v231_v2, %v231_v2 }
  0xed   :  { %301 = vst.msk [vmem:[%s540_s3 + $0x10] sm:$0xf] %vm296_vm1, %v356_v3  ;;  %309 = vst.msk [vmem:[%s540_s3 + $0x30] sm:$0xf] %vm296_vm1, %v364_v4  ;;  %v357_v9 = vpack.c.bf16 %v221_v5, %v221_v5  ;;  %v365_v10 = vpack.c.bf16 %v229_v6, %v229_v6 }
  0xee   :  { %304 = vst.msk [vmem:[%s540_s3 + $0x1c] sm:$0xf] %vm296_vm1, %v359_v7  ;;  %312 = vst.msk [vmem:[%s540_s3 + $0x3c] sm:$0xf] %vm296_vm1, %v367_v8 }
  0xef   :  { %302 = vst.msk [vmem:[%s540_s3 + $0x14] sm:$0xf] %vm296_vm1, %v357_v9  ;;  %310 = vst.msk [vmem:[%s540_s3 + $0x34] sm:$0xf] %vm296_vm1, %v365_v10 }

</bundles_post_ra>
